<compile_context>
chip_gen: v6e
topology: v6e:2x2x1
jax: 0.10.0
libtpu: 0.0.40
codegen_flags: <defaults>
</compile_context>

<pallas_src>
import jax
import jax.numpy as jnp
from jax.experimental import pallas as pl
from jax.experimental.pallas import tpu as pltpu

# small, TPU-friendly synthetic config (stand-in for hidden=768, seq=512)
BATCH = 16
SEQ = 16
HIDDEN = 128
FC1_DIM = 64
NUM_CLASSES = 6
PADDED_CLASSES = 128          # lane-dense output; sliced back to 6 in wrapper
P_DROP = 0.5                  # config['dropout']
TILE_B = 8                    # batch tile (sublane-aligned)


def essay_head_kernel(cls_ref, mask_ref, wp_ref, bp_ref, w12_ref, b12_ref,
                      out_ref):
    # --- BERT pooler: tanh(Linear(hidden, hidden)) on the [CLS] token ---
    pooled = jnp.tanh(
        jnp.dot(cls_ref[...], wp_ref[...], preferred_element_type=jnp.float32)
        + bp_ref[...]
    )                                                            # (tB, H) f32

    # --- Dropout: pre-scaled mask (0 or 1/(1-p)) computed in the wrapper ---
    dropped = (pooled * mask_ref[...]).astype(jnp.bfloat16)      # (tB, H)

    # --- fused fc1 @ fc2 (+ fused bias), class dim padded to 128 lanes ---
    logits = (
        jnp.dot(dropped, w12_ref[...], preferred_element_type=jnp.float32)
        + b12_ref[...]
    )                                                            # (tB, 128)

    out_ref[...] = logits.astype(out_ref.dtype)


def essay_model_forward(last_hidden_state, params, dropout_key, training=True):
    """last_hidden_state: (B, S, H) f32. Returns (B, NUM_CLASSES) f32 logits."""
    B = last_hidden_state.shape[0]
    H = last_hidden_state.shape[2]

    # Only the CLS row feeds the head: slice before pallas_call so the kernel
    # never DMAs the full [B, S, H] hidden state (S x less HBM traffic).
    cls = last_hidden_state[:, 0, :]                             # (B, H)

    # Training-mode dropout mask, pre-scaled: 0 or 1/(1-p). Vary dropout_key
    # per training step for fresh masks; training=False gives the eval path.
    if training:
        keep = jax.random.bernoulli(dropout_key, 1.0 - P_DROP, cls.shape)
        mask = keep.astype(jnp.float32) * (1.0 / (1.0 - P_DROP))
    else:
        mask = jnp.ones(cls.shape, jnp.float32)

    # Fuse fc1/fc2 (no nonlinearity between them) and lane-pad to 128 classes.
    w12 = params["w_fc1"] @ params["w_fc2"]                      # (H, 6)
    b12 = params["b_fc1"] @ params["w_fc2"] + params["b_fc2"]    # (1, 6)
    pad_c = PADDED_CLASSES - NUM_CLASSES
    w12 = jnp.pad(w12, ((0, 0), (0, pad_c))).astype(jnp.bfloat16)
    b12 = jnp.pad(b12, ((0, 0), (0, pad_c)))

    w_pool = params["w_pool"].astype(jnp.bfloat16)
    b_pool = params["b_pool"]

    # Pad batch up to a multiple of the tile, then cast activations to bf16.
    Bp = TILE_B * pl.cdiv(B, TILE_B)
    if Bp != B:
        cls = jnp.pad(cls, ((0, Bp - B), (0, 0)))
        mask = jnp.pad(mask, ((0, Bp - B), (0, 0)))
    cls = cls.astype(jnp.bfloat16)

    padded_logits = pl.pallas_call(
        essay_head_kernel,
        out_shape=jax.ShapeDtypeStruct((Bp, PADDED_CLASSES), jnp.float32),
        grid=(Bp // TILE_B,),
        in_specs=[
            pl.BlockSpec((TILE_B, H), lambda i: (i, 0)),           # CLS tile
            pl.BlockSpec((TILE_B, H), lambda i: (i, 0)),           # dropout mask
            pl.BlockSpec((H, H), lambda i: (0, 0)),                # pooler W (resident)
            pl.BlockSpec((1, H), lambda i: (0, 0)),                # pooler b
            pl.BlockSpec((H, PADDED_CLASSES), lambda i: (0, 0)),   # fused fc W
            pl.BlockSpec((1, PADDED_CLASSES), lambda i: (0, 0)),   # fused fc b
        ],
        out_specs=pl.BlockSpec((TILE_B, PADDED_CLASSES), lambda i: (i, 0)),
        compiler_params=pltpu.CompilerParams(
            dimension_semantics=("parallel",)),
    )(cls, mask, w_pool, b_pool, w12, b12)

    return padded_logits[:B, :NUM_CLASSES]


def init_params(key):
    ks = jax.random.split(key, 6)
    scale = 0.02
    return {
        "w_pool": scale * jax.random.normal(ks[0], (HIDDEN, HIDDEN), jnp.float32),
        "b_pool": scale * jax.random.normal(ks[1], (1, HIDDEN), jnp.float32),
        "w_fc1":  scale * jax.random.normal(ks[2], (HIDDEN, FC1_DIM), jnp.float32),
        "b_fc1":  scale * jax.random.normal(ks[3], (1, FC1_DIM), jnp.float32),
        "w_fc2":  scale * jax.random.normal(ks[4], (FC1_DIM, NUM_CLASSES), jnp.float32),
        "b_fc2":  scale * jax.random.normal(ks[5], (1, NUM_CLASSES), jnp.float32),
    }


if __name__ == "__main__":
    key = jax.random.PRNGKey(0)
    k_x, k_p, k_drop = jax.random.split(key, 3)

    # synthetic encoder last_hidden_state (stand-in for BERT output)
    x = jax.random.normal(k_x, (BATCH, SEQ, HIDDEN), jnp.float32)
    params = init_params(k_p)

    logits = essay_model_forward(x, params, dropout_key=k_drop, training=True)
    logits = jax.block_until_ready(logits)

    assert logits.shape == (BATCH, NUM_CLASSES)
    assert logits.dtype == jnp.float32
    assert bool(jnp.all(jnp.isfinite(logits)))
    print("KERNEL_OK")
</pallas_src>

<mosaic_0001>
module attributes {stable_mosaic.version = 11 : i64} {
  func.func @essay_head_kernel(%arg0: i32, %arg1: memref<8x128xbf16, #tpu.memory_space<vmem>>, %arg2: memref<8x128xf32, #tpu.memory_space<vmem>>, %arg3: memref<128x128xbf16, #tpu.memory_space<vmem>>, %arg4: memref<1x128xf32, #tpu.memory_space<vmem>>, %arg5: memref<128x128xbf16, #tpu.memory_space<vmem>>, %arg6: memref<1x128xf32, #tpu.memory_space<vmem>>, %arg7: memref<8x128xf32, #tpu.memory_space<vmem>>) attributes {dimension_semantics = [#tpu.dimension_semantics<parallel>], iteration_bounds = array<i64: 2>, scalar_prefetch = 0 : i64, scratch_operands = 0 : i64, tpu.core_type = #tpu.core_type<tc>, window_params = [{transform_indices = @transform_0, window_bounds = array<i64: 8, 128>}, {transform_indices = @transform_1, window_bounds = array<i64: 8, 128>}, {pipeline_mode = #tpu.pipeline_mode<synchronous>, transform_indices = @transform_2, window_bounds = array<i64: 128, 128>}, {pipeline_mode = #tpu.pipeline_mode<synchronous>, transform_indices = @transform_3, window_bounds = array<i64: 1, 128>}, {pipeline_mode = #tpu.pipeline_mode<synchronous>, transform_indices = @transform_4, window_bounds = array<i64: 128, 128>}, {pipeline_mode = #tpu.pipeline_mode<synchronous>, transform_indices = @transform_5, window_bounds = array<i64: 1, 128>}, {transform_indices = @transform_6, window_bounds = array<i64: 8, 128>}]} {
    %c0 = arith.constant 0 : index
    %c0_0 = arith.constant 0 : index
    %0 = vector.load %arg1[%c0, %c0_0] : memref<8x128xbf16, #tpu.memory_space<vmem>>, vector<8x128xbf16>
    %c0_1 = arith.constant 0 : index
    %c0_2 = arith.constant 0 : index
    %1 = vector.load %arg3[%c0_1, %c0_2] : memref<128x128xbf16, #tpu.memory_space<vmem>>, vector<128x128xbf16>
    %cst = arith.constant dense<0.000000e+00> : vector<8x128xf32>
    %2 = tpu.matmul %0, %1, %cst {dimension_numbers = #tpu.dot_dimension_numbers<[1], [0], [0], [1], [0, 0, 1, 1], [], []>} : vector<8x128xbf16>, vector<128x128xbf16>, vector<8x128xf32> -> vector<8x128xf32>
    %c0_3 = arith.constant 0 : index
    %c0_4 = arith.constant 0 : index
    %3 = vector.load %arg4[%c0_3, %c0_4] : memref<1x128xf32, #tpu.memory_space<vmem>>, vector<1x128xf32>
    %4 = vector.broadcast %3 : vector<1x128xf32> to vector<8x128xf32>
    %5 = arith.addf %2, %4 : vector<8x128xf32>
    %6 = math.tanh %5 : vector<8x128xf32>
    %c0_5 = arith.constant 0 : index
    %c0_6 = arith.constant 0 : index
    %7 = vector.load %arg2[%c0_5, %c0_6] : memref<8x128xf32, #tpu.memory_space<vmem>>, vector<8x128xf32>
    %8 = arith.mulf %6, %7 : vector<8x128xf32>
    %9 = arith.truncf %8 : vector<8x128xf32> to vector<8x128xbf16>
    %c0_7 = arith.constant 0 : index
    %c0_8 = arith.constant 0 : index
    %10 = vector.load %arg5[%c0_7, %c0_8] : memref<128x128xbf16, #tpu.memory_space<vmem>>, vector<128x128xbf16>
    %cst_9 = arith.constant dense<0.000000e+00> : vector<8x128xf32>
    %11 = tpu.matmul %9, %10, %cst_9 {dimension_numbers = #tpu.dot_dimension_numbers<[1], [0], [0], [1], [0, 0, 1, 1], [], []>} : vector<8x128xbf16>, vector<128x128xbf16>, vector<8x128xf32> -> vector<8x128xf32>
    %c0_10 = arith.constant 0 : index
    %c0_11 = arith.constant 0 : index
    %12 = vector.load %arg6[%c0_10, %c0_11] : memref<1x128xf32, #tpu.memory_space<vmem>>, vector<1x128xf32>
    %13 = vector.broadcast %12 : vector<1x128xf32> to vector<8x128xf32>
    %14 = arith.addf %11, %13 : vector<8x128xf32>
    %c0_12 = arith.constant 0 : index
    %c0_13 = arith.constant 0 : index
    %15 = vector.load %arg7[%c0_12, %c0_13] : memref<8x128xf32, #tpu.memory_space<vmem>>, vector<8x128xf32>
    tpu.vector_store %arg7[%c0_12, %c0_13], %14 {strides = array<i32>} : memref<8x128xf32, #tpu.memory_space<vmem>>, vector<8x128xf32>,
    return
  }
  func.func @transform_0(%arg0: i32) -> (i32, i32) {
    %c0_i32 = arith.constant 0 : i32
    %c0_i32_0 = arith.constant 0 : i32
    return %arg0, %c0_i32 : i32, i32
  }
  func.func @transform_1(%arg0: i32) -> (i32, i32) {
    %c0_i32 = arith.constant 0 : i32
    %c0_i32_0 = arith.constant 0 : i32
    return %arg0, %c0_i32 : i32, i32
  }
  func.func @transform_2(%arg0: i32) -> (i32, i32) {
    %c0_i32 = arith.constant 0 : i32
    %c0_i32_0 = arith.constant 0 : i32
    %c0_i32_1 = arith.constant 0 : i32
    return %c0_i32, %c0_i32_0 : i32, i32
  }
  func.func @transform_3(%arg0: i32) -> (i32, i32) {
    %c0_i32 = arith.constant 0 : i32
    %c0_i32_0 = arith.constant 0 : i32
    %c0_i32_1 = arith.constant 0 : i32
    return %c0_i32, %c0_i32_0 : i32, i32
  }
  func.func @transform_4(%arg0: i32) -> (i32, i32) {
    %c0_i32 = arith.constant 0 : i32
    %c0_i32_0 = arith.constant 0 : i32
    %c0_i32_1 = arith.constant 0 : i32
    return %c0_i32, %c0_i32_0 : i32, i32
  }
  func.func @transform_5(%arg0: i32) -> (i32, i32) {
    %c0_i32 = arith.constant 0 : i32
    %c0_i32_0 = arith.constant 0 : i32
    %c0_i32_1 = arith.constant 0 : i32
    return %c0_i32, %c0_i32_0 : i32, i32
  }
  func.func @transform_6(%arg0: i32) -> (i32, i32) {
    %c0_i32 = arith.constant 0 : i32
    %c0_i32_0 = arith.constant 0 : i32
    return %arg0, %c0_i32 : i32, i32
  }
}

</mosaic_0001>

<bundles_post_ra>
// kernel: tpu_custom_call.1
= control target key start
LH: loop header
LB: loop body
LE: loop exit
PB: predicated region body
PF: predicated region fallthrough
CT: control target
= control target key end

     0   :  { %s1356_s0 = inlined_call_operand.hbm [shape: bf16[16,128], index: 0, kind: input, shape index: {}]   ;;  %s1357_s1 = inlined_call_operand.hbm [shape: f32[16,128], index: 1, kind: input, shape index: {}]   ;;  %s1358_s2 = inlined_call_operand.hbm [shape: bf16[128,128], index: 2, kind: input, shape index: {}]   ;;  %s1359_s3 = inlined_call_operand.vmem [shape: f32[1,128], index: 3, kind: input, shape index: {}]   ;;  %s1360_s4 = inlined_call_operand.hbm [shape: bf16[128,128], index: 4, kind: input, shape index: {}]   ;;  %s1361_s5 = inlined_call_operand.vmem [shape: f32[1,128], index: 5, kind: input, shape index: {}]   ;;  %s1362_s6 = inlined_call_operand.hbm [shape: f32[16,128], index: 6, kind: output, shape index: {}]  }
   0x1   :  { %1367 = sst [smem:[#allocation16_spill]] %s1356_s0 }
   0x2   :  { %1368 = sst [smem:[#allocation17_spill]] %s1358_s2 }
   0x3   :  { %11 = vsyncpa [#allocation3], 0 }
   0x4   :  { %13 = vsyncpa [#allocation3 + $0x1], 0 }
   0x5   :  { %14 = vsyncpa [#allocation6], 0 }
   0x6   :  { %16 = vsyncpa [#allocation6 + $0x1], 0 }
   0x7   :  { %17 = vsyncpa [#allocation9], 0 }
   0x8   :  { %18 = vsyncpa [#allocation4], 0 }
   0x9   :  { %20 = vsyncpa [#allocation4 + $0x1], 0  ;;  %s1107_s21 = smov 0   ;;  %s1109_s22 = smov 0  }
   0xa   :  { %s1111_s23 = smov 0   ;;  %s1113_s24 = smov 0  }
   0xb LB: > { %s1128_s25 = sadd.s32 4294967295, %s1061_s24   ;;  %s688_s26 = sadd.s32 4294967294, %s1061_s24   ;;  %s1061_s24 = sphi %s1113_s24, %s1392_s24   ;;  %s1057_s23 = sphi %s1111_s23, %s1391_s23   ;;  %s1053_s22 = sphi %s1109_s22, %s1390_s22   ;;  %s1049_s21 = sphi %s1107_s21, %s1389_s21  }
   0xc   : > { %p46_p0 = scmp.ne.s32.totalorder %s1053_s22, %s1049_s21  ;;  %p1363_p1 = scmp.eq.s32.totalorder %s1128_s25, 0 }
   0xd   : > { %p186_p3 = scmp.eq.s32.totalorder %s688_s26, 1  ;;  %p689_p5 = scmp.ge.s32.totalorder %s1061_s24, 1 }
   0xe   : > { %p1137_p4 = por %p1363_p1, %p46_p0  ;;  %p193_p7 = scmp.lt.s32.totalorder %s1061_s24, 3 }
   0xf   : > { %p1142_p6 = por %p186_p3, %p46_p0  ;;  %s1063_s30 = smov [#allocation7]  }
  0x10   : > { %s1369_s27 = scalar_select %p1137_p4, 1, 0 }
  0x11   : > { %s1370_s28 = scalar_select %p1142_p6, 1, 0 }
  0x12   : > { %p1147_p8 = pnand %p689_p5, %p193_p7  ;;  %s205_s7 = sshll.u32 %s1063_s30, 4  ;;  %s206_s7 = int_to_ptr.vmem [resolvable:$true] %s205_s7 }
  0x13   : > { %s1064_s9 = smov [#allocation8]   ;;  %s888_s11 = scalar_lea.vmem %s206_s7, 1024 }
  0x14   : > { %s1371_s29 = scalar_select %p1147_p8, 1, 0 }
  0x15   : > { %p797_p9 = pneg %p1147_p8  ;;  %s221_s10 = sshll.u32 %s1064_s9, 4  ;;  %s222_s10 = int_to_ptr.vmem [resolvable:$true] %s221_s10 }
  0x16   : > { %p889_p13 = scmp.ne.s32.totalorder %s206_s7, %s888_s11  ;;  %p896_p5 = scmp.lt.s32.totalorder %s206_s7, %s206_s7 }
  0x17   : > { %p1156_p11 = pnand %p797_p9, %p1363_p1  ;;  %p897_p7 = scmp.lt.s32.totalorder %s888_s11, %s888_s11 }
  0x19   : > { %p879_p12 = pneg %p1156_p11  ;;  %p898_p10 = por %p897_p7, %p896_p5 }
  0x1b   : > { %p891_p0 = pnand %p889_p13, %p879_p12 }
  0x1d   : > { %p892_p3 = pneg %p891_p0 }
  0x1f   : > { %p899_p9 = pnand %p898_p10, %p892_p3 }
  0x21   : > { %902 = shalt.err (!%p899_p9)
}
  0x22   : > { %s1065_s12 = smov 64   ;;  %s1066_s13 = smov 4  }
  0x23   : > { %s1373_s2 = sld [smem:[#allocation17_spill]]  ;;  %s914_s16 = scalar_lea.vmem %s222_s10, 1024 }
  0x24   : > { %p915_p1 = scmp.ne.s32.totalorder %s222_s10, %s914_s16  ;;  %p922_p2 = scmp.lt.s32.totalorder %s222_s10, %s222_s10 }
  0x25   : > { %p923_p6 = scmp.lt.s32.totalorder %s914_s16, %s914_s16 }
  0x26   : > { %p917_p13 = pnand %p915_p1, %p879_p12 }
  0x27   : > { %p924_p5 = por %p923_p6, %p922_p2 }
  0x28   : > { %p918_p0 = pneg %p917_p13 }
  0x29   : > { %800 = dma.hbm_to_vmem [thread:$0]  (!%p1156_p11), %s1373_s2, 1024, %s206_s7, [#allocation6], %s1065_s12, %s1065_s12, %s1066_s13  }
  0x2a   : > { %p925_p10 = pnand %p924_p5, %p918_p0 }
  0x2c   : > { %928 = shalt.err (!%p925_p10)
}
  0x2d   : > { %803 = dma.hbm_to_vmem [thread:$0]  (!%p1156_p11), %s1360_s4, 1024, %s222_s10, [#allocation9], %s1065_s12, %s1065_s12, %s1066_s13  }
  0x2e   : > { %s1179_s19 = sadd.s32 1, %s1061_s24   ;;  %s33_s20 = sadd.s32 1, %s1057_s23 }
  0x2f   : > { %s30_s26 = ssub.s32 %s1061_s24, %s1179_s19  ;;  %p40_p1 = scmp.ne.s32.totalorder %s1057_s23, %s1053_s22 }
  0x30   : > { %p31_p2 = scmp.eq.s32.totalorder %s30_s26, 0  ;;  %p41_p6 = scmp.eq.s32.totalorder %s1061_s24, 0 }
  0x31   : > { %p1374_p12 = scmp.eq.s32.totalorder %s1128_s25, 1  ;;  %p817_p7 = scmp.lt.s32.totalorder %s1061_s24, 2 }
  0x32   : > { %s1195_s7 = scalar_select %p31_p2, %s1057_s23, %s33_s20  }
  0x33   : > { %p1189_p3 = por %p1374_p12, %p40_p1  ;;  %p42_p9 = por %p41_p6, %p40_p1 }
  0x34   : > { %s1198_s8 = sand.u32 1, %s1057_s23   ;;  %s694_s10 = sshll.u32 %s1061_s24, 6 }
  0x35   : > { %s1375_s30 = scalar_select %p1189_p3, 1, 0 }
  0x36   : > { %s693_s9 = sshll.u32 %s1198_s8, 2  ;;  %s1376_s0 = sld [smem:[#allocation16_spill]] }
  0x37   : > { %s242_s14 = scalar_lea.vmem [#allocation2], %s693_s9  ;;  %p1209_p11 = pnand %p817_p7, %p42_p9 }
  0x38   : > { %s249_s15 = sshll.u32 %s242_s14, 4  ;;  %s239_s20 = scalar_lea.sflag [#allocation3], %s1198_s8  ;;  %s1207_s15 = int_to_ptr.vmem [resolvable:$true] %s249_s15 }
  0x39   : > { %p931_p0 = pneg %p1209_p11 }
  0x3c   : > { %s1205_s13 = scalar_lea.hbm %s1376_s0, %s694_s10  ;;  %s934_s11 = scalar_lea.hbm %s1376_s0, 128 }
  0x3d   : > { %s929_s26 = scalar_lea.hbm %s1205_s13, 64  ;;  %p935_p1 = scmp.lt.s32.totalorder %s1205_s13, %s1376_s0 }
  0x3e   : > { %p930_p13 = scmp.ne.s32.totalorder %s1205_s13, %s929_s26  ;;  %p936_p2 = scmp.lt.s32.totalorder %s934_s11, %s929_s26 }
  0x40   : > { %p932_p5 = pnand %p931_p0, %p930_p13  ;;  %p937_p6 = por %p936_p2, %p935_p1 }
  0x42   : > { %p933_p10 = pneg %p932_p5 }
  0x44   : > { %p938_p12 = pnand %p937_p6, %p933_p10 }
  0x46   : > { %941 = shalt.err (!%p938_p12)
}
  0x47   : > { %s942_s17 = scalar_lea.vmem %s1207_s15, 64  ;;  %s1067_s9 = smov [#allocation2]  }
  0x48   : > { %p943_p7 = scmp.ne.s32.totalorder %s1207_s15, %s942_s17  ;;  %s947_s10 = sshll.u32 %s1067_s9, 4  ;;  %s948_s10 = int_to_ptr.vmem [resolvable:$false] %s947_s10 }
  0x49   : > { %s949_s18 = scalar_lea.vmem %s948_s10, 128  ;;  %p950_p5 = scmp.lt.s32.totalorder %s1207_s15, %s948_s10 }
  0x4a   : > { %p945_p9 = pnand %p943_p7, %p931_p0  ;;  %p951_p3 = scmp.lt.s32.totalorder %s949_s18, %s942_s17 }
  0x4c   : > { %p946_p13 = pneg %p945_p9  ;;  %p952_p4 = por %p951_p3, %p950_p5 }
  0x4e   : > { %p953_p1 = pnand %p952_p4, %p946_p13 }
  0x50   : > { %956 = shalt.err (!%p953_p1)
}
  0x51   : > { %807 = dma.hbm_to_vmem [thread:$0]  (!%p1209_p11), %s1205_s13, 64, %s1207_s15, %s239_s20  }
  0x52   : > { %s696_s26 = sshll.u32 %s1061_s24, 7  ;;  %s1378_s9 = sshll.u32 %s1198_s8, 3 }
  0x53   : > { %s1244_s14 = scalar_lea.hbm %s1357_s1, %s696_s26  ;;  %s260_s17 = scalar_lea.vmem [#allocation5], %s1378_s9 }
  0x54   : > { %s267_s18 = sshll.u32 %s260_s17, 4  ;;  %s1379_s10 = sand.u32 1, %s1061_s24   ;;  %s268_s18 = int_to_ptr.vmem [resolvable:$true] %s267_s18 }
  0x55   : > { %s257_s0 = scalar_lea.sflag [#allocation6], %s1379_s10  ;;  %s957_s2 = scalar_lea.hbm %s1244_s14, 128 }
  0x56   : > { %p958_p4 = scmp.ne.s32.totalorder %s1244_s14, %s957_s2  ;;  %s962_s20 = scalar_lea.hbm %s1357_s1, 256 }
  0x57   : > { %p963_p2 = scmp.lt.s32.totalorder %s1244_s14, %s1357_s1  ;;  %p964_p6 = scmp.lt.s32.totalorder %s962_s20, %s957_s2 }
  0x58   : > { %p960_p3 = pnand %p958_p4, %p931_p0 }
  0x59   : > { %p965_p12 = por %p964_p6, %p963_p2 }
  0x5a   : > { %p961_p10 = pneg %p960_p3 }
  0x5c   : > { %p966_p7 = pnand %p965_p12, %p961_p10 }
  0x5e   : > { %969 = shalt.err (!%p966_p7)
}
  0x5f   : > { %s970_s11 = scalar_lea.vmem %s268_s18, 128  ;;  %s1068_s12 = smov [#allocation5]  }
  0x60   : > { %p971_p9 = scmp.ne.s32.totalorder %s268_s18, %s970_s11  ;;  %s975_s9 = sshll.u32 %s1068_s12, 4  ;;  %s976_s9 = int_to_ptr.vmem [resolvable:$false] %s975_s9 }
  0x61   : > { %s977_s17 = scalar_lea.vmem %s976_s9, 256  ;;  %p978_p1 = scmp.lt.s32.totalorder %s268_s18, %s976_s9 }
  0x62   : > { %p973_p13 = pnand %p971_p9, %p931_p0  ;;  %p979_p4 = scmp.lt.s32.totalorder %s977_s17, %s970_s11 }
  0x64   : > { %p974_p5 = pneg %p973_p13  ;;  %p980_p3 = por %p979_p4, %p978_p1 }
  0x66   : > { %p981_p8 = pnand %p980_p3, %p974_p5 }
  0x68   : > { %984 = shalt.err (!%p981_p8)
}
  0x69   : > { %810 = dma.hbm_to_vmem [thread:$0]  (!%p1209_p11), %s1244_s14, 128, %s268_s18, %s257_s0  }
  0x6a   : > { %p1380_p10 = scmp.ne.s32.totalorder %s1371_s29, 0 }
  0x6b   : > { %s1271_s2 = sand.u32 (!%p1380_p10), 1, %s1053_s22   ;;  %p1381_p0 = scmp.ne.s32.totalorder (!%p1380_p10), %s1369_s27, 0 }
  0x6c   : > { %276 = sbr.rel (%p1380_p10) target bundleno = 579 (0x243), region = 44  ;;  %s698_s10 = sshll.u32 (!%p1380_p10), %s1271_s2, 2 }
  0x6d   : > { %s279_s13 = scalar_lea.sflag (!%p1380_p10), [#allocation3], %s1271_s2  ;;  %s1275_s15 = scalar_lea.vmem (!%p1380_p10), [#allocation2], %s698_s10 }
  0x71   : > { %1028 = dma.done.wait (%p1381_p0), %s279_s13, 64  }
  0x72   : > { %1030 = vsyncadd (%p1381_p0), %s279_s13, 4294967232  ;;  %s287_s0 = sand.u32 1, %s1128_s25   ;;  %s699_s29 = sshll.u32 %s1271_s2, 3 }
  0x73   : > { %s288_s16 = scalar_lea.sflag [#allocation6], %s287_s0  ;;  %s1285_s14 = scalar_lea.vmem [#allocation5], %s699_s29 }
  0x74   : > { %1032 = dma.done.wait (%p1381_p0), %s288_s16, 128  }
  0x75   : > { %1034 = vsyncadd (%p1381_p0), %s288_s16, 4294967168  ;;  %p1382_p8 = scmp.eq.s32.totalorder %s1128_s25, 0 }
  0x77   : > { %1036 = dma.done.wait (%p1382_p8), [#allocation6], 1024   ;;  %p1383_p11 = pmov %p1382_p8 }
  0x78   : > { %p1384_p2 = pmov %p1382_p8 }
  0x79   : > { %1038 = vsyncadd (%p1383_p11), [#allocation6], 4294966272 }
  0x7a   : > { %1040 = dma.done.wait (%p1384_p2), [#allocation9], 1024   ;;  %p1385_p6 = pmov %p1384_p2 }
  0x7b   : > { %v1069_v0 = vmov 0.0   ;;  %vm1070_vm0 = vmmov 0   ;;  %v859_v1 = vld [vmem:[#allocation7 + $0x38] sm:$0xff]   ;;  %v860_v2 = vld [vmem:[#allocation7 + $0x30] sm:$0xff]   ;;  %v861_v3 = vld [vmem:[#allocation7 + $0x28] sm:$0xff]   ;;  %s722_s8 = sshll.u32 %s1128_s25, 7 }
  0x7c   : > { %1042 = vsyncadd (%p1385_p6), [#allocation9], 4294966272  ;;  %743 = vmatprep.subr.bf16.mxu0 %v1069_v0  ;;  %759 = vmatprep.mubr.msk.bf16.mxu0 %vm1070_vm0, %v1069_v0  ;;  %v867_v4 = vld [vmem:[#allocation8 + $0x38] sm:$0xff]   ;;  %v862_v5 = vld [vmem:[#allocation7 + $0x20] sm:$0xff]   ;;  %s332_s11 = scalar_lea.vmem [#allocation10], %s699_s29  ;;  %s1313_s10 = scalar_lea.hbm %s1362_s6, %s722_s8 }
  0x7d   : > { %763 = vmatprep.subr.bf16.mxu1 %v1069_v0  ;;  %779 = vmatprep.mubr.msk.bf16.mxu1 %vm1070_vm0, %v1069_v0  ;;  %v868_v6 = vld [vmem:[#allocation8 + $0x30] sm:$0xff]   ;;  %v863_v7 = vld [vmem:[#allocation7 + $0x18] sm:$0xff]   ;;  %v869_v8 = vld [vmem:[#allocation8 + $0x28] sm:$0xff]   ;;  %s576_s12 = sshll.u32 %s332_s11, 4  ;;  %s563_s13 = scalar_lea.sflag [#allocation4], %s1271_s2  ;;  %s1315_s12 = int_to_ptr.vmem [resolvable:$true] %s576_s12 }
  0x7e   : > { %744 = vmatpush3.bf16.msra.mxu0 %v859_v1  ;;  %764 = vmatpush3.bf16.msra.mxu1 %v867_v4  ;;  %v864_v9 = vld [vmem:[#allocation7 + $0x10] sm:$0xff]   ;;  %v865_v10 = vld [vmem:[#allocation7 + $0x8] sm:$0xff]   ;;  %v866_v11 = vld [vmem:[#allocation7] sm:$0xff]   ;;  %s985_s25 = scalar_lea.vmem %s1315_s12, 128  ;;  %p1386_p7 = scmp.ne.s32.totalorder %s1375_s30, 0 }
  0x7f   : > { %745 = vmatprep.subr.bf16.mxu0 %v1069_v0  ;;  %765 = vmatprep.subr.bf16.mxu1 %v1069_v0  ;;  %v334_v12 = vld [vmem:[%s1275_s15] sm:$0xf]  ;;  %v870_v13 = vld [vmem:[#allocation8 + $0x20] sm:$0xff]   ;;  %v871_v14 = vld [vmem:[#allocation8 + $0x18] sm:$0xff]   ;;  %p986_p12 = scmp.ne.s32.totalorder %s1315_s12, %s985_s25  ;;  %s1071_s15 = smov [#allocation10]  }
  0x80   : > { %v872_v15 = vld [vmem:[#allocation8 + $0x10] sm:$0xff]   ;;  %v873_v16 = vld [vmem:[#allocation8 + $0x8] sm:$0xff]   ;;  %v874_v17 = vld [vmem:[#allocation8] sm:$0xff]   ;;  %s989_s0 = sshll.u32 %s1071_s15, 4  ;;  %s990_s0 = int_to_ptr.vmem [resolvable:$false] %s989_s0 }
  0x81   : > { %v703_v18 = vld [vmem:[%s1359_s3] ss:$0 sm:$0xff]  ;;  %v447_v24 = vld [vmem:[%s1285_s14] sm:$0xff]  ;;  %p987_p9 = pnand %p986_p12, %p1386_p7  ;;  %s991_s29 = scalar_lea.vmem %s990_s0, 256 }
  0x82   : > { %746 = vmatpush3.bf16.msra.mxu0 %v860_v2  ;;  %766 = vmatpush3.bf16.msra.mxu1 %v868_v6  ;;  %v712_v28 = vld [vmem:[%s1361_s5] ss:$0 sm:$0xff]  ;;  %p992_p5 = scmp.lt.s32.totalorder %s1315_s12, %s990_s0  ;;  %p993_p1 = scmp.lt.s32.totalorder %s991_s29, %s985_s25 }
  0x83   : > { %747 = vmatprep.subr.bf16.mxu0 %v1069_v0  ;;  %767 = vmatprep.subr.bf16.mxu1 %v1069_v0  ;;  %p988_p13 = pneg %p987_p9 }
  0x84   : > { %p994_p4 = por %p993_p1, %p992_p5 }
  0x86   : > { %748 = vmatpush3.bf16.msra.mxu0 %v861_v3  ;;  %768 = vmatpush3.bf16.msra.mxu1 %v869_v8  ;;  %p995_p3 = pnand %p994_p4, %p988_p13 }
  0x87   : > { %749 = vmatprep.subr.bf16.mxu0 %v1069_v0  ;;  %769 = vmatprep.subr.bf16.mxu1 %v1069_v0 }
  0x8a   : > { %750 = vmatpush3.bf16.msra.mxu0 %v862_v5  ;;  %770 = vmatpush3.bf16.msra.mxu1 %v870_v13 }
  0x8b   : > { %751 = vmatprep.subr.bf16.mxu0 %v1069_v0  ;;  %771 = vmatprep.subr.bf16.mxu1 %v1069_v0 }
  0x8e   : > { %752 = vmatpush3.bf16.msra.mxu0 %v863_v7  ;;  %772 = vmatpush3.bf16.msra.mxu1 %v871_v14 }
  0x8f   : > { %753 = vmatprep.subr.bf16.mxu0 %v1069_v0  ;;  %773 = vmatprep.subr.bf16.mxu1 %v1069_v0 }
  0x92   : > { %754 = vmatpush3.bf16.msra.mxu0 %v864_v9  ;;  %774 = vmatpush3.bf16.msra.mxu1 %v872_v15 }
  0x93   : > { %755 = vmatprep.subr.bf16.mxu0 %v1069_v0  ;;  %775 = vmatprep.subr.bf16.mxu1 %v1069_v0 }
  0x96   : > { %756 = vmatpush3.bf16.msra.mxu0 %v865_v10  ;;  %776 = vmatpush3.bf16.msra.mxu1 %v873_v16 }
  0x97   : > { %757 = vmatprep.subr.bf16.mxu0 %v1069_v0  ;;  %777 = vmatprep.subr.bf16.mxu1 %v1069_v0 }
  0x9a   : > { %758 = vmatpush3.bf16.msra.mxu0 %v866_v11  ;;  %778 = vmatpush3.bf16.msra.mxu1 %v874_v17 }
  0x9d   : > { %760 = vmatmul.mubr.bf16.vlgmr.msra.gmra.mxu0 %v334_v12 }
 0x15d   : > { %v440_v19 = vpop.f32.mrf.mxu0 }
 0x15e   : > { %v441_v20 = vadd.f32 %v703_v18, %v440_v19 }
 0x15f   : > { %v761_v21 = vpop.f32.mrf.mxu0 }
 0x160   : > { %875 = vtanh.f32 %v441_v20 }
 0x161   : > { %v443_v22 = vpop.f32.mrf.mxu0 }
 0x163   : > { %v762_v23 = vpop.f32.mrf.mxu0 }
 0x16d   : > { %v876_v25 = vpop.eup %875 }
 0x16e   : > { %v448_v26 = vmul.f32 %v876_v25, %v447_v24 }
 0x170   : > { %v449_v27 = vpack.c.bf16 %v448_v26, %v448_v26 }
 0x172   : > { %780 = vmatmul.mubr.bf16.vlgmr.msra.gmra.mxu1 %v449_v27 }
 0x232   : > { %v555_v29 = vpop.f32.mrf.mxu1 }
 0x233   : > { %v556_v30 = vadd.f32 %v712_v28, %v555_v29 }
 0x234   : > { %v781_v31 = vpop.f32.mrf.mxu1 }
 0x235   : > { %561 = vst [vmem:[%s332_s11] sm:$0xff] %v556_v30 }
 0x236   : > { %v558_v32 = vpop.f32.mrf.mxu1 }
 0x237   : > { %998 = shalt.err (!%p995_p3)
}
 0x238   : > { %s999_s16 = scalar_lea.hbm %s1313_s10, 128  ;;  %s1003_s27 = scalar_lea.hbm %s1362_s6, 256 }
 0x239   : > { %p1000_p10 = scmp.ne.s32.totalorder %s1313_s10, %s999_s16  ;;  %p1004_p11 = scmp.lt.s32.totalorder %s1313_s10, %s1362_s6 }
 0x23a   : > { %p1005_p2 = scmp.lt.s32.totalorder %s1003_s27, %s999_s16 }
 0x23b   : > { %p1001_p0 = pnand %p1000_p10, %p1386_p7 }
 0x23c   : > { %p1006_p6 = por %p1005_p2, %p1004_p11 }
 0x23d   : > { %p1002_p8 = pneg %p1001_p0 }
 0x23f   : > { %p1007_p12 = pnand %p1006_p6, %p1002_p8 }
 0x241   : > { %1010 = shalt.err (!%p1007_p12)
}
 0x242   : > { %795 = dma.vmem_to_hbm [thread:$0]  (%p1386_p7), %s1315_s12, 128, %s1313_s10, %s563_s13   ;;  %v782_v33 = vpop.f32.mrf.mxu1 }
 0x243 PF: > { %s588_s26 = sand.u32 1, %s1049_s21   ;;  %p1387_p9 = scmp.ne.s32.totalorder %s1370_s28, 0 }
 0x244   : > { %p1388_p13 = scmp.ge.s32.totalorder %s1061_s24, 2  ;;  %s589_s8 = scalar_lea.sflag [#allocation4], %s588_s26 }
 0x246   : > { %p812_p5 = pnand %p1388_p13, %p1387_p9 }
 0x248   : > { %p813_p1 = pneg %p812_p5 }
 0x24a   : > { %1044 = dma.done.wait (%p813_p1), %s589_s8, 128  }
 0x24b   : > { %1046 = vsyncadd (%p813_p1), %s589_s8, 4294967168  ;;  %p23_p4 = scmp.ge.s32.totalorder %s1179_s19, 4   ;;  %s1389_s21 = smov %s1053_s22 }
 0x24c   : > { %s1390_s22 = smov %s1057_s23  ;;  %s1391_s23 = smov %s1195_s7 }
 0x24d   : > { %s1392_s24 = smov %s1179_s19  ;;  %25 = sbr.rel (!%p23_p4) target bundleno = 11 (0xb), region = 110 }
 0x252   :  { %594 = vsyncpa [#allocation3], 1 }
 0x253   :  { %596 = vsyncpa [#allocation3 + $0x1], 1 }
 0x254   :  { %597 = vsyncpa [#allocation6], 1 }
 0x255   :  { %599 = vsyncpa [#allocation6 + $0x1], 1 }
 0x256   :  { %600 = vsyncpa [#allocation9], 1 }
 0x257   :  { %601 = vsyncpa [#allocation4], 1 }
 0x258   :  { %603 = vsyncpa [#allocation4 + $0x1], 1 }

</bundles_post_ra>
